<compile_context>
chip_gen: v7x
topology: tpu7x:2x2x1
jax: 0.10.0
libtpu: 0.0.40
codegen_flags: <defaults>
</compile_context>

<pallas_src>
import functools

import jax
import jax.numpy as jnp
from jax.experimental import pallas as pl
from jax.experimental.pallas import tpu as pltpu

_VMEM_LIMIT = 48 * 1024 * 1024   # fits v7x (64 MiB physical), ample on v5e/v6e


def _round_up(x, m):
    return ((x + m - 1) // m) * m


def _largest_tile(n_pad, cap):
    """Largest multiple of 128 that divides n_pad and is <= cap (n_pad % 128 == 0)."""
    cap = max(128, min(cap, n_pad))
    best = 128
    t = 128
    while t <= cap:
        if n_pad % t == 0:
            best = t
        t += 128
    return best


def _choose_tiles(n_pad, tile_m_cap=1024, tile_k_cap=2048):
    # >= 2 row tiles whenever possible so v7x's two TensorCores both get work.
    tm_cap = tile_m_cap if n_pad < 256 else min(tile_m_cap, n_pad // 2)
    return _largest_tile(n_pad, tm_cap), _largest_tile(n_pad, tile_k_cap)


def _in_spec(block_shape, index_map, depth=None):
    """BlockSpec with optional deeper pipelining; falls back if unsupported."""
    if depth is not None and hasattr(pl, "Buffered"):
        try:
            return pl.BlockSpec(block_shape, index_map, pipeline_mode=pl.Buffered(depth))
        except TypeError:
            pass
    return pl.BlockSpec(block_shape, index_map)


# --------------------- Pallas kernel 1: layer-1 feature transform ----------- #
# xw = bf16(x) @ w, tiled over node rows; weight block stays VMEM-resident.

def _linear_kernel(x_ref, w_ref, out_ref):
    out_ref[...] = jnp.dot(
        x_ref[...].astype(jnp.bfloat16), w_ref[...],
        preferred_element_type=jnp.float32,
    ).astype(out_ref.dtype)


def linear(x, w, *, tile_m):
    n_pad, f_pad = x.shape
    hp = w.shape[1]
    return pl.pallas_call(
        _linear_kernel,
        out_shape=jax.ShapeDtypeStruct((n_pad, hp), jnp.bfloat16),
        grid_spec=pltpu.PrefetchScalarGridSpec(
            num_scalar_prefetch=0,
            grid=(n_pad // tile_m,),
            in_specs=[
                pl.BlockSpec((tile_m, f_pad), lambda i: (i, 0)),
                pl.BlockSpec((f_pad, hp), lambda i: (0, 0)),   # resident weight
            ],
            out_specs=pl.BlockSpec((tile_m, hp), lambda i: (i, 0)),
        ),
        compiler_params=pltpu.CompilerParams(
            dimension_semantics=("parallel",),
            vmem_limit_bytes=_VMEM_LIMIT,
        ),
    )(x, w)


# ----------- Pallas kernel 2a: aggregation fused with next linear ----------- #
# acc = M @ XW_l ; finalize: XW_{l+1} = relu(acc + b_l).bf16 @ W_{l+1}  (bf16 out)

def _aggregate_fused_kernel(m_ref, xw_ref, b_ref, wn_ref, out_ref, acc_ref):
    @pl.when(pl.program_id(1) == 0)
    def _():
        acc_ref[...] = jnp.zeros_like(acc_ref)

    acc_ref[...] += jnp.dot(
        m_ref[...], xw_ref[...], preferred_element_type=jnp.float32
    )

    @pl.when(pl.program_id(1) == pl.num_programs(1) - 1)
    def _():
        h = jnp.maximum(acc_ref[...] + b_ref[...], 0.0).astype(jnp.bfloat16)
        out_ref[...] = jnp.dot(
            h, wn_ref[...], preferred_element_type=jnp.float32
        ).astype(out_ref.dtype)


def aggregate_fused(m, xw, b, w_next, *, tile_m, tile_k):
    n_pad = m.shape[0]
    hp_cur = xw.shape[1]
    hp_next = w_next.shape[1]
    return pl.pallas_call(
        _aggregate_fused_kernel,
        out_shape=jax.ShapeDtypeStruct((n_pad, hp_next), jnp.bfloat16),
        grid_spec=pltpu.PrefetchScalarGridSpec(
            num_scalar_prefetch=0,
            grid=(n_pad // tile_m, n_pad // tile_k),
            in_specs=[
                _in_spec((tile_m, tile_k), lambda i, k: (i, k), depth=3),   # M tile
                _in_spec((tile_k, hp_cur), lambda i, k: (k, 0), depth=3),   # XW tile
                pl.BlockSpec((1, hp_cur), lambda i, k: (0, 0)),             # bias
                pl.BlockSpec((hp_cur, hp_next), lambda i, k: (0, 0)),       # W_{l+1}
            ],
            out_specs=pl.BlockSpec((tile_m, hp_next), lambda i, k: (i, 0)),
            scratch_shapes=[pltpu.VMEM((tile_m, hp_cur), jnp.float32)],
        ),
        compiler_params=pltpu.CompilerParams(
            dimension_semantics=("parallel", "arbitrary"),
            vmem_limit_bytes=_VMEM_LIMIT,
        ),
    )(m, xw, b, w_next)


# ----------------- Pallas kernel 2b: final-layer aggregation ---------------- #
# out = M @ XW_L + b_L  (f32 output, no ReLU, no fusion)

def _aggregate_final_kernel(m_ref, xw_ref, b_ref, out_ref, acc_ref):
    @pl.when(pl.program_id(1) == 0)
    def _():
        acc_ref[...] = jnp.zeros_like(acc_ref)

    acc_ref[...] += jnp.dot(
        m_ref[...], xw_ref[...], preferred_element_type=jnp.float32
    )

    @pl.when(pl.program_id(1) == pl.num_programs(1) - 1)
    def _():
        out_ref[...] = (acc_ref[...] + b_ref[...]).astype(out_ref.dtype)


def aggregate_final(m, xw, b, *, tile_m, tile_k):
    n_pad = m.shape[0]
    hp = xw.shape[1]
    return pl.pallas_call(
        _aggregate_final_kernel,
        out_shape=jax.ShapeDtypeStruct((n_pad, hp), jnp.float32),
        grid_spec=pltpu.PrefetchScalarGridSpec(
            num_scalar_prefetch=0,
            grid=(n_pad // tile_m, n_pad // tile_k),
            in_specs=[
                _in_spec((tile_m, tile_k), lambda i, k: (i, k), depth=3),
                _in_spec((tile_k, hp), lambda i, k: (k, 0), depth=3),
                pl.BlockSpec((1, hp), lambda i, k: (0, 0)),
            ],
            out_specs=pl.BlockSpec((tile_m, hp), lambda i, k: (i, 0)),
            scratch_shapes=[pltpu.VMEM((tile_m, hp), jnp.float32)],
        ),
        compiler_params=pltpu.CompilerParams(
            dimension_semantics=("parallel", "arbitrary"),
            vmem_limit_bytes=_VMEM_LIMIT,
        ),
    )(m, xw, b)


# ------------------------- glue: graph normalization ------------------------ #

def build_normalized_adjacency(edge_index, num_nodes, n_pad=None, dtype=jnp.bfloat16):
    """Dense M (built directly at padded size, single scatter, single cast):
       M[i, j] = sum_{edges j->i} w / deg[i],  M[i, i] += 1 / deg[i],
       deg[i] = 1 + #incoming non-self-loop edges, matching the gcn_norm above."""
    if n_pad is None:
        n_pad = num_nodes
    src = edge_index[0]
    dst = edge_index[1]
    w = (src != dst).astype(jnp.float32)                 # drop original self-loops
    deg = jnp.zeros((num_nodes,), jnp.float32).at[dst].add(w) + 1.0   # + self-loop
    inv_deg = 1.0 / deg                                   # = deg_inv_sqrt[col]**2
    nodes = jnp.arange(num_nodes, dtype=dst.dtype)
    rows = jnp.concatenate([dst, nodes])
    cols = jnp.concatenate([src, nodes])
    vals = jnp.concatenate([w * inv_deg[dst], inv_deg])
    m = jnp.zeros((n_pad, n_pad), jnp.float32).at[rows, cols].add(vals)
    return m.astype(dtype)


# ------------------------------ model wrapper ------------------------------- #

def glorot(key, shape):
    fan_out, fan_in = shape
    a = jnp.sqrt(6.0 / (fan_in + fan_out))
    return jax.random.uniform(key, shape, jnp.float32, -a, a)


def init_params(key, nfeat, nhid, nclass, nlayer=3):
    """Glorot weights / zero biases, pre-transposed to (in, out), zero-padded so
    every in/out width is a multiple of 128, and pre-cast to bf16 once."""
    fp = _round_up(nfeat, 128)
    hp = _round_up(nhid, 128)
    cp = _round_up(nclass, 128)
    keys = jax.random.split(key, nlayer)

    def pad_wt(w, in_pad, out_pad):
        wt = w.T                                  # (in, out)
        full = (jnp.zeros((in_pad, out_pad), jnp.float32)
                .at[: wt.shape[0], : wt.shape[1]].set(wt))
        return full.astype(jnp.bfloat16)

    weights = [pad_wt(glorot(keys[0], (nhid, nfeat)), fp, hp)]
    biases = [jnp.zeros((1, hp), jnp.float32)]
    for i in range(nlayer - 2):                   # convx layers
        weights.append(pad_wt(glorot(keys[1 + i], (nhid, nhid)), hp, hp))
        biases.append(jnp.zeros((1, hp), jnp.float32))
    weights.append(pad_wt(glorot(keys[-1], (nclass, nhid)), hp, cp))
    biases.append(jnp.zeros((1, cp), jnp.float32))
    return {"weights": weights, "biases": biases, "nclass": nclass}


def stand_gcn_x_forward(x, edge_index, params):
    """Forward pass of StandGCNX (eval mode)."""
    n, f = x.shape
    weights = params["weights"]
    biases = params["biases"]
    f_pad = weights[0].shape[0]
    n_pad = _round_up(n, 128)
    tile_m, tile_k = _choose_tiles(n_pad)

    # One normalized adjacency reused by every layer (see header), built bf16
    # directly at padded size (single scatter + single cast, no jnp.pad pass).
    m = build_normalized_adjacency(edge_index, n, n_pad, dtype=jnp.bfloat16)

    x_pad = (jnp.zeros((n_pad, f_pad), jnp.float32)
             .at[:n, :f].set(x.astype(jnp.float32)))

    # Layer-1 feature transform (cast to bf16 inside the kernel).
    xw = linear(x_pad, weights[0], tile_m=tile_m)            # (n_pad, Hp) bf16

    # TODO(synk): F.dropout between layers is skipped (eval-mode identity; no
    #             bitwise PyTorch-matching RNG available here).
    nl = len(weights)
    out = None
    for li in range(nl):
        if li < nl - 1:
            # fused: aggregate layer li, then immediately apply W_{li+1};
            # intermediate hidden state never touches HBM.
            xw = aggregate_fused(m, xw, biases[li], weights[li + 1],
                                 tile_m=tile_m, tile_k=tile_k)   # bf16
        else:
            out = aggregate_final(m, xw, biases[li],
                                  tile_m=tile_m, tile_k=tile_k)  # f32
    return out[:n, : params["nclass"]]


# ----------------------------- pure-JAX reference --------------------------- #

def reference_forward(x, edge_index, params):
    """Reference with the same bf16 quantization points as the kernel path."""
    f32, bf16 = jnp.float32, jnp.bfloat16
    n, f = x.shape
    f_pad = params["weights"][0].shape[0]
    m = build_normalized_adjacency(edge_index, n, n, dtype=bf16).astype(f32)
    h = jnp.zeros((n, f_pad), f32).at[:, :f].set(x.astype(f32))
    nl = len(params["weights"])
    for li, (w_t, b) in enumerate(zip(params["weights"], params["biases"])):
        hq = h.astype(bf16).astype(f32)
        wq = w_t.astype(f32)                     # weights are already bf16
        xw = jnp.dot(hq, wq).astype(bf16).astype(f32)
        h = jnp.dot(m, xw) + b
        if li < nl - 1:
            h = jnp.maximum(h, 0.0)
    return h[:, : params["nclass"]]


# ----------------------------------- main ------------------------------------ #

if __name__ == "__main__":
    nfeat, nhid, nclass, nlayer = 16, 32, 8, 3
    num_nodes, num_edges = 16, 40

    key = jax.random.PRNGKey(0)
    k_x, k_src, k_dst, k_p = jax.random.split(key, 4)

    x = jax.random.normal(k_x, (num_nodes, nfeat), jnp.float32)
    edge_index = jnp.stack(
        [
            jax.random.randint(k_src, (num_edges,), 0, num_nodes, jnp.int32),
            jax.random.randint(k_dst, (num_edges,), 0, num_nodes, jnp.int32),
        ],
        axis=0,
    )
    params = init_params(k_p, nfeat, nhid, nclass, nlayer)

    out = stand_gcn_x_forward(x, edge_index, params)
    out = jax.block_until_ready(out)
    assert out.shape == (num_nodes, nclass)

    ref = reference_forward(x, edge_index, params)
    assert jnp.allclose(out, ref, atol=1e-2, rtol=1e-2), float(
        jnp.max(jnp.abs(out - ref))
    )

    print("KERNEL_OK")
</pallas_src>

<mosaic_0001>
module attributes {stable_mosaic.version = 11 : i64} {
  func.func @_linear_kernel(%arg0: i32, %arg1: memref<128x128xf32, #tpu.memory_space<vmem>>, %arg2: memref<128x128xbf16, #tpu.memory_space<vmem>>, %arg3: memref<128x128xbf16, #tpu.memory_space<vmem>>) attributes {dimension_semantics = [#tpu.dimension_semantics<parallel>], iteration_bounds = array<i64: 1>, scalar_prefetch = 0 : i64, scratch_operands = 0 : i64, tpu.core_type = #tpu.core_type<tc>, window_params = [{transform_indices = @transform_0, window_bounds = array<i64: 128, 128>}, {pipeline_mode = #tpu.pipeline_mode<synchronous>, transform_indices = @transform_1, window_bounds = array<i64: 128, 128>}, {transform_indices = @transform_2, window_bounds = array<i64: 128, 128>}]} {
    %c0 = arith.constant 0 : index
    %c0_0 = arith.constant 0 : index
    %0 = vector.load %arg1[%c0, %c0_0] : memref<128x128xf32, #tpu.memory_space<vmem>>, vector<128x128xf32>
    %1 = arith.truncf %0 : vector<128x128xf32> to vector<128x128xbf16>
    %c0_1 = arith.constant 0 : index
    %c0_2 = arith.constant 0 : index
    %2 = vector.load %arg2[%c0_1, %c0_2] : memref<128x128xbf16, #tpu.memory_space<vmem>>, vector<128x128xbf16>
    %cst = arith.constant dense<0.000000e+00> : vector<128x128xf32>
    %3 = tpu.matmul %1, %2, %cst {dimension_numbers = #tpu.dot_dimension_numbers<[1], [0], [0], [1], [0, 0, 1, 1], [], []>} : vector<128x128xbf16>, vector<128x128xbf16>, vector<128x128xf32> -> vector<128x128xf32>
    %4 = arith.truncf %3 : vector<128x128xf32> to vector<128x128xbf16>
    %c0_3 = arith.constant 0 : index
    %c0_4 = arith.constant 0 : index
    %5 = vector.load %arg3[%c0_3, %c0_4] : memref<128x128xbf16, #tpu.memory_space<vmem>>, vector<128x128xbf16>
    tpu.vector_store %arg3[%c0_3, %c0_4], %4 {strides = array<i32>} : memref<128x128xbf16, #tpu.memory_space<vmem>>, vector<128x128xbf16>,
    return
  }
  func.func @transform_0(%arg0: i32) -> (i32, i32) {
    %c0_i32 = arith.constant 0 : i32
    %c0_i32_0 = arith.constant 0 : i32
    return %arg0, %c0_i32 : i32, i32
  }
  func.func @transform_1(%arg0: i32) -> (i32, i32) {
    %c0_i32 = arith.constant 0 : i32
    %c0_i32_0 = arith.constant 0 : i32
    %c0_i32_1 = arith.constant 0 : i32
    return %c0_i32, %c0_i32_0 : i32, i32
  }
  func.func @transform_2(%arg0: i32) -> (i32, i32) {
    %c0_i32 = arith.constant 0 : i32
    %c0_i32_0 = arith.constant 0 : i32
    return %arg0, %c0_i32 : i32, i32
  }
}

</mosaic_0001>

<bundles_post_ra>
// kernel: tpu_custom_call.1
= control target key start
LH: loop header
LB: loop body
LE: loop exit
PB: predicated region body
PF: predicated region fallthrough
CT: control target
= control target key end

     0   :  { %7 = vsyncpa [#allocation3], 0  ;;  %s626_s0 = inlined_call_operand.hbm [shape: f32[128,128], index: 0, kind: input, shape index: {}]   ;;  %s627_s1 = inlined_call_operand.hbm [shape: bf16[128,128], index: 1, kind: input, shape index: {}]   ;;  %s628_s2 = inlined_call_operand.hbm [shape: bf16[128,128], index: 2, kind: output, shape index: {}]  }
   0x1   :  { %8 = vsyncpa [#allocation6], 0 }
   0x2   :  { %9 = vsyncpa [#allocation4], 0  ;;  %s562_s9 = smov [#allocation2]   ;;  %s490_s13 = scalar_lea.hbm %s626_s0, 2048 }
   0x3   :  { %s15_s10 = sshll.u32 %s562_s9, 4  ;;  %p491_p0 = scmp.ne.s32.totalorder %s626_s0, %s490_s13  ;;  %s16_s10 = int_to_ptr.vmem [resolvable:$true] %s15_s10 }
   0x4   :  { %p494_p1 = scmp.lt.u32.totalorder %s490_s13, %s626_s0 }
   0x6   :  { %p496_p2 = pnand %p494_p1, %p491_p0 }
   0x8   :  { %499 = shalt.err (!%p496_p2)
}
   0x9   :  { %s500_s18 = scalar_lea.vmem %s16_s10, 2048  ;;  %p505_p4 = scmp.lt.s32.totalorder %s16_s10, %s16_s10 }
   0xa   :  { %p501_p3 = scmp.ne.s32.totalorder %s16_s10, %s500_s18  ;;  %p506_p5 = scmp.lt.s32.totalorder %s500_s18, %s500_s18 }
   0xc   :  { %p507_p6 = por %p506_p5, %p505_p4 }
   0xe   :  { %p508_p7 = pnand %p507_p6, %p501_p3 }
  0x10   :  { %511 = shalt.err (!%p508_p7)
}
  0x11   :  { %s563_s19 = smov 128   ;;  %s564_s20 = smov 8  }
  0x12   :  { %21 = dma.hbm_to_vmem [thread:$0]  %s626_s0, 2048, %s16_s10, [#allocation3], %s563_s19, %s563_s19, %s564_s20  }
  0x13   :  { %s565_s23 = smov [#allocation5]   ;;  %s512_s27 = scalar_lea.hbm %s627_s1, 1024 }
  0x14   :  { %s27_s24 = sshll.u32 %s565_s23, 4  ;;  %p513_p8 = scmp.ne.s32.totalorder %s627_s1, %s512_s27  ;;  %s28_s24 = int_to_ptr.vmem [resolvable:$true] %s27_s24 }
  0x15   :  { %p516_p9 = scmp.lt.u32.totalorder %s512_s27, %s627_s1 }
  0x17   :  { %p518_p10 = pnand %p516_p9, %p513_p8 }
  0x19   :  { %521 = shalt.err (!%p518_p10)
}
  0x1a   :  { %s522_s4 = scalar_lea.vmem %s28_s24, 1024  ;;  %p527_p12 = scmp.lt.s32.totalorder %s28_s24, %s28_s24 }
  0x1b   :  { %p523_p11 = scmp.ne.s32.totalorder %s28_s24, %s522_s4  ;;  %p528_p13 = scmp.lt.s32.totalorder %s522_s4, %s522_s4 }
  0x1d   :  { %p529_p0 = por %p528_p13, %p527_p12 }
  0x1f   :  { %p530_p1 = pnand %p529_p0, %p523_p11 }
  0x21   :  { %533 = shalt.err (!%p530_p1)
}
  0x22   :  { %s566_s0 = smov 64   ;;  %s567_s5 = smov 4  }
  0x23   :  { %33 = dma.hbm_to_vmem [thread:$0]  %s627_s1, 1024, %s28_s24, [#allocation6], %s566_s0, %s566_s0, %s567_s5  }
  0x24   :  { %556 = dma.done.wait [#allocation3], 2048  }
  0x25   :  { %557 = vsyncadd [#allocation3], 4294965248 }
  0x26   :  { %558 = dma.done.wait [#allocation6], 1024  }
  0x27   :  { %559 = vsyncadd [#allocation6], 4294966272  ;;  %v482_v0 = vld [vmem:[#allocation5] sm:$0xff]   ;;  %v483_v1 = vld [vmem:[#allocation5 + $0x8] sm:$0xff]   ;;  %s568_s1 = smov [#allocation7]  }
  0x28   :  { %427 = vmatprep.subr.bf16.mxu0 %v482_v0  ;;  %459 = vmatprep.subr.bf16.mxu1 %v482_v0  ;;  %v484_v2 = vld [vmem:[#allocation5 + $0x10] sm:$0xff]   ;;  %v485_v3 = vld [vmem:[#allocation5 + $0x18] sm:$0xff]   ;;  %v41_v4 = vld [vmem:[#allocation2] sm:$0xff]  ;;  %s311_s8 = sshll.u32 %s568_s1, 4  ;;  %s312_s8 = int_to_ptr.vmem [resolvable:$true] %s311_s8 }
  0x29   :  { %428 = vmatpush3.bf16.msra.mxu0 %v482_v0  ;;  %467 = vmatpush3.bf16.msra.mxu1 %v482_v0  ;;  %v42_v5 = vld [vmem:[#allocation2 + $0x8] sm:$0xff]  ;;  %v49_v6 = vld [vmem:[#allocation2 + $0x40] sm:$0xff]  ;;  %v488_v12 = vld [vmem:[#allocation5 + $0x30] sm:$0xff]   ;;  %s534_s9 = scalar_lea.vmem %s312_s8, 1024  ;;  %p539_p3 = scmp.lt.s32.totalorder %s312_s8, %s312_s8 }
  0x2a   :  { %429 = vmatprep.subr.bf16.mxu0 %v483_v1  ;;  %460 = vmatprep.subr.bf16.mxu1 %v483_v1  ;;  %v57_v7 = vpack.c.bf16 %v42_v5, %v41_v4  ;;  %v50_v8 = vld [vmem:[#allocation2 + $0x48] sm:$0xff]  ;;  %v486_v10 = vld [vmem:[#allocation5 + $0x20] sm:$0xff]   ;;  %v489_v13 = vld [vmem:[#allocation5 + $0x38] sm:$0xff]   ;;  %p535_p2 = scmp.ne.s32.totalorder %s312_s8, %s534_s9  ;;  %p540_p4 = scmp.lt.s32.totalorder %s534_s9, %s534_s9 }
  0x2b   :  { %v61_v9 = vpack.c.bf16 %v50_v8, %v49_v6  ;;  %v487_v11 = vld [vmem:[#allocation5 + $0x28] sm:$0xff]   ;;  %v43_v14 = vld [vmem:[#allocation2 + $0x10] sm:$0xff]  ;;  %v44_v15 = vld [vmem:[#allocation2 + $0x18] sm:$0xff] }
  0x2c   :  { %443 = vmatprep.mubr.bf16.mxu0 %v57_v7  ;;  %v51_v16 = vld [vmem:[#allocation2 + $0x50] sm:$0xff]  ;;  %v52_v17 = vld [vmem:[#allocation2 + $0x58] sm:$0xff]  ;;  %v45_v18 = vld [vmem:[#allocation2 + $0x20] sm:$0xff]  ;;  %v58_v22 = vpack.c.bf16 %v44_v15, %v43_v14  ;;  %p541_p5 = por %p540_p4, %p539_p3 }
  0x2d   :  { %430 = vmatpush3.bf16.msra.mxu0 %v483_v1  ;;  %468 = vmatpush3.bf16.msra.mxu1 %v483_v1  ;;  %v46_v19 = vld [vmem:[#allocation2 + $0x28] sm:$0xff]  ;;  %v53_v20 = vld [vmem:[#allocation2 + $0x60] sm:$0xff]  ;;  %v62_v23 = vpack.c.bf16 %v52_v17, %v51_v16  ;;  %v47_v26 = vld [vmem:[#allocation2 + $0x30] sm:$0xff] }
  0x2e   :  { %431 = vmatprep.subr.bf16.mxu0 %v484_v2  ;;  %461 = vmatprep.subr.bf16.mxu1 %v484_v2  ;;  %v54_v21 = vld [vmem:[#allocation2 + $0x68] sm:$0xff]  ;;  %v59_v24 = vpack.c.bf16 %v46_v19, %v45_v18  ;;  %v48_v27 = vld [vmem:[#allocation2 + $0x38] sm:$0xff]  ;;  %v55_v28 = vld [vmem:[#allocation2 + $0x70] sm:$0xff]  ;;  %p542_p6 = pnand %p541_p5, %p535_p2 }
  0x2f   :  { %451 = vmatprep.mubr.bf16.mxu1 %v61_v9  ;;  %v63_v25 = vpack.c.bf16 %v54_v21, %v53_v20  ;;  %v56_v29 = vld [vmem:[#allocation2 + $0x78] sm:$0xff]  ;;  %v60_v30 = vpack.c.bf16 %v48_v27, %v47_v26 }
  0x30   :  { %v64_v31 = vpack.c.bf16 %v56_v29, %v55_v28 }
  0x31   :  { %432 = vmatpush3.bf16.msra.mxu0 %v484_v2  ;;  %469 = vmatpush3.bf16.msra.mxu1 %v484_v2 }
  0x32   :  { %433 = vmatprep.subr.bf16.mxu0 %v485_v3  ;;  %462 = vmatprep.subr.bf16.mxu1 %v485_v3 }
  0x35   :  { %434 = vmatpush3.bf16.msra.mxu0 %v485_v3  ;;  %470 = vmatpush3.bf16.msra.mxu1 %v485_v3 }
  0x36   :  { %435 = vmatprep.subr.bf16.mxu0 %v486_v10  ;;  %463 = vmatprep.subr.bf16.mxu1 %v486_v10 }
  0x39   :  { %436 = vmatpush3.bf16.msra.mxu0 %v486_v10  ;;  %471 = vmatpush3.bf16.msra.mxu1 %v486_v10 }
  0x3a   :  { %437 = vmatprep.subr.bf16.mxu0 %v487_v11  ;;  %464 = vmatprep.subr.bf16.mxu1 %v487_v11 }
  0x3d   :  { %438 = vmatpush3.bf16.msra.mxu0 %v487_v11  ;;  %472 = vmatpush3.bf16.msra.mxu1 %v487_v11 }
  0x3e   :  { %439 = vmatprep.subr.bf16.mxu0 %v488_v12  ;;  %465 = vmatprep.subr.bf16.mxu1 %v488_v12 }
  0x41   :  { %440 = vmatpush3.bf16.msra.mxu0 %v488_v12  ;;  %473 = vmatpush3.bf16.msra.mxu1 %v488_v12 }
  0x42   :  { %441 = vmatprep.subr.bf16.mxu0 %v489_v13  ;;  %466 = vmatprep.subr.bf16.mxu1 %v489_v13 }
  0x45   :  { %442 = vmatpush3.bf16.msra.mxu0 %v489_v13  ;;  %474 = vmatpush3.bf16.msra.mxu1 %v489_v13 }
  0x48   :  { %444 = vmatmul.mubr.bf16.vlgmr.msra.gmra.mrb[0].mxu0 %v58_v22  ;;  %452 = vmatmul.mubr.bf16.vlgmr.msra.gmra.mrb[0].mxu1 %v62_v23 }
  0x49   :  { %447 = vmatprep.mubr.bf16.mxu0 %v59_v24  ;;  %455 = vmatprep.mubr.bf16.mxu1 %v63_v25 }
  0x50   :  { %448 = vmatmul.mubr.bf16.gmra.mrb[4].mxu0 %v60_v30  ;;  %456 = vmatmul.mubr.bf16.gmra.mrb[4].mxu1 %v64_v31 }
 0x11b   :  { %v445_v32 = vpop.f32.mrb[0].mxu0  ;;  %v453_v33 = vpop.f32.mrb[0].mxu1 }
 0x11c   :  { %v163_v34 = vpop.f32.mrb[1].mxu0  ;;  %v195_v35 = vpop.f32.mrb[1].mxu1 }
 0x11d   :  { %v446_v36 = vpop.f32.mrb[2].mxu0  ;;  %v454_v37 = vpop.f32.mrb[2].mxu1 }
 0x11e   :  { %v372_v38 = vpack.c.bf16 %v446_v36, %v445_v32  ;;  %v392_v39 = vpack.c.bf16 %v454_v37, %v453_v33  ;;  %v166_v40 = vpop.f32.mrb[3].mxu0  ;;  %v198_v41 = vpop.f32.mrb[3].mxu1 }
 0x11f   :  { %v367_v42 = vpack.c.bf16 %v166_v40, %v163_v34  ;;  %v387_v43 = vpack.c.bf16 %v198_v41, %v195_v35 }
 0x120   :  { %404 = vst [vmem:[#allocation7 + $0x8] sm:$0xff] %v372_v38   ;;  %408 = vst [vmem:[#allocation7 + $0x28] sm:$0xff] %v392_v39  }
 0x121   :  { %368 = vst [vmem:[#allocation7] sm:$0xff] %v367_v42   ;;  %407 = vst [vmem:[#allocation7 + $0x20] sm:$0xff] %v387_v43  }
 0x123   :  { %v449_v44 = vpop.f32.mrb[4].mxu0  ;;  %v457_v45 = vpop.f32.mrb[4].mxu1 }
 0x124   :  { %v179_v46 = vpop.f32.mrb[5].mxu0  ;;  %v211_v47 = vpop.f32.mrb[5].mxu1 }
 0x125   :  { %v450_v48 = vpop.f32.mrb[6].mxu0  ;;  %v458_v49 = vpop.f32.mrb[6].mxu1 }
 0x126   :  { %v382_v50 = vpack.c.bf16 %v450_v48, %v449_v44  ;;  %v402_v51 = vpack.c.bf16 %v458_v49, %v457_v45  ;;  %v182_v52 = vpop.f32.mrb[7].mxu0  ;;  %v214_v53 = vpop.f32.mrb[7].mxu1 }
 0x127   :  { %v377_v54 = vpack.c.bf16 %v182_v52, %v179_v46  ;;  %v397_v55 = vpack.c.bf16 %v214_v53, %v211_v47 }
 0x128   :  { %406 = vst [vmem:[#allocation7 + $0x18] sm:$0xff] %v382_v50   ;;  %410 = vst [vmem:[#allocation7 + $0x38] sm:$0xff] %v402_v51  }
 0x129   :  { %405 = vst [vmem:[#allocation7 + $0x10] sm:$0xff] %v377_v54   ;;  %409 = vst [vmem:[#allocation7 + $0x30] sm:$0xff] %v397_v55  }
 0x12a   :  { %545 = shalt.err (!%p542_p6)
}
 0x12b   :  { %s546_s12 = scalar_lea.hbm %s628_s2, 1024 }
 0x12c   :  { %p547_p7 = scmp.ne.s32.totalorder %s628_s2, %s546_s12  ;;  %p550_p8 = scmp.lt.u32.totalorder %s546_s12, %s628_s2 }
 0x12e   :  { %p552_p9 = pnand %p550_p8, %p547_p7 }
 0x130   :  { %555 = shalt.err (!%p552_p9)
}
 0x131   :  { %317 = dma.vmem_to_hbm [thread:$0]  %s312_s8, 1024, %s628_s2, [#allocation4], %s566_s0, %s566_s0, %s567_s5  }
 0x132   :  { %560 = dma.done.wait [#allocation4], 1024  }
 0x133   :  { %561 = vsyncadd [#allocation4], 4294966272 }
 0x134   :  { %321 = vsyncpa [#allocation3], 1 }
 0x135   :  { %322 = vsyncpa [#allocation6], 1 }
 0x136   :  { %323 = vsyncpa [#allocation4], 1 }

</bundles_post_ra>
